<compile_context>
chip_gen: v7x
topology: tpu7x:2x2x1
jax: 0.10.0
libtpu: 0.0.40
codegen_flags: <defaults>
</compile_context>

<pallas_src>
import functools

import jax
import jax.numpy as jnp
from jax.experimental import pallas as pl
from jax.experimental.pallas import tpu as pltpu


def _conv_bn_act_kernel(x_ref, w_ref, scale_ref, bias_ref, o_ref, *,
                        ksize, stride, out_h, out_w, act):
    """One batch element per grid step.

    x_ref:     (1, stride, Cin, Hp, Wq)  phase-split, zero-padded input (native dtype)
    w_ref:     (K*K, Cout, Cin)          per-tap weight matrices
    scale_ref: (Cout, 1)  folded BN scale (f32)
    bias_ref:  (Cout, 1)  folded BN bias  (f32)
    o_ref:     (1, Cout, OH, OW)
    """
    w_taps = w_ref[...]          # (K*K, Cout, Cin)
    scale = scale_ref[...]       # (Cout, 1) -> broadcasts over lanes (OW)
    bias = bias_ref[...]         # (Cout, 1)
    cout = w_taps.shape[1]

    @pl.loop(0, out_h)
    def _(oy):
        acc = jnp.zeros((cout, out_w), jnp.float32)
        # Static unrolled loop over the K*K taps: each tap is one MXU matmul.
        for ky in range(ksize):
            iy = oy * stride + ky
            for kx in range(ksize):
                phase = kx % stride          # which W-phase holds this tap
                col0 = kx // stride          # static column offset within the phase
                seg = x_ref[0, phase, :, pl.ds(iy, 1), pl.ds(col0, out_w)]  # (Cin,1,OW)
                seg = seg[:, 0, :]                                          # (Cin, OW)
                acc = acc + jnp.dot(w_taps[ky * ksize + kx], seg,
                                    preferred_element_type=jnp.float32)

        # Folded BatchNorm + activation epilogue (f32), then cast to output dtype.
        y = acc * scale + bias
        if act == "relu":
            y = jnp.maximum(y, 0.0)
        elif act == "hard_swish":
            y = y * jnp.clip(y + 3.0, 0.0, 6.0) * (1.0 / 6.0)
        o_ref[0, :, pl.ds(oy, 1), :] = y[:, None, :].astype(o_ref.dtype)


def conv_bn_act(x, conv_weight, bn_gamma, bn_beta, bn_mean, bn_var, *,
                stride=1, padding=0, groups=1, act=None, eps=1e-5):
    """Fused Conv2d(bias=False) + BatchNorm2d(eval) + activation.

    x:           (N, Cin, H, W)       NCHW, PyTorch layout
    conv_weight: (Cout, Cin, K, K)    PyTorch OIHW layout
    bn_*:        (Cout,)              BatchNorm2d parameters / running stats
    act:         None | 'relu' | 'hard_swish'
    """
    if groups != 1:
        # TODO(synk): grouped / depthwise convolution not supported in the kernel.
        raise NotImplementedError("groups > 1 not implemented in Pallas kernel")
    if act not in (None, "relu", "hard_swish"):
        raise ValueError(f"unsupported act: {act!r}")

    N, Cin, H, W = x.shape
    Cout, Cin_w, K, K2 = conv_weight.shape
    assert K == K2 and Cin_w == Cin

    OH = (H + 2 * padding - K) // stride + 1
    OW = (W + 2 * padding - K) // stride + 1

    # ---- Fold BatchNorm (eval mode / running stats) into scale & bias (f32). ----
    inv_std = 1.0 / jnp.sqrt(bn_var.astype(jnp.float32) + eps)
    scale = (bn_gamma.astype(jnp.float32) * inv_std).reshape(Cout, 1)
    bias = (bn_beta.astype(jnp.float32)
            - bn_mean.astype(jnp.float32) * (bn_gamma.astype(jnp.float32) * inv_std)
            ).reshape(Cout, 1)

    # ---- Per-tap weight matrices: (K*K, Cout, Cin). ----
    w_taps = jnp.transpose(conv_weight, (2, 3, 0, 1)).reshape(K * K, Cout, Cin)

    # ---- Zero-pad spatially; split the W axis into `stride` phases so the ----
    # ---- kernel only ever does contiguous (unit-stride) lane loads.        ----
    Hp = H + 2 * padding
    Wp0 = W + 2 * padding
    Wq = -(-Wp0 // stride)          # ceil(Wp0 / stride)
    Wp = Wq * stride
    xp = jnp.pad(x, ((0, 0), (0, 0),
                     (padding, padding),
                     (padding, padding + (Wp - Wp0))))
    # (N, stride, Cin, Hp, Wq); for stride=1 this is just a trivial reshape.
    xph = jnp.transpose(xp.reshape(N, Cin, Hp, Wq, stride), (0, 4, 1, 2, 3))

    kernel = functools.partial(_conv_bn_act_kernel, ksize=K, stride=stride,
                               out_h=OH, out_w=OW, act=act)

    return pl.pallas_call(
        kernel,
        out_shape=jax.ShapeDtypeStruct((N, Cout, OH, OW), x.dtype),
        grid_spec=pltpu.PrefetchScalarGridSpec(
            num_scalar_prefetch=0,
            grid=(N,),
            in_specs=[
                pl.BlockSpec((1, stride, Cin, Hp, Wq), lambda n: (n, 0, 0, 0, 0)),
                pl.BlockSpec((K * K, Cout, Cin), lambda n: (0, 0, 0)),
                pl.BlockSpec((Cout, 1), lambda n: (0, 0)),
                pl.BlockSpec((Cout, 1), lambda n: (0, 0)),
            ],
            out_specs=pl.BlockSpec((1, Cout, OH, OW), lambda n: (n, 0, 0, 0)),
        ),
        compiler_params=pltpu.CompilerParams(
            dimension_semantics=("parallel",),
            vmem_limit_bytes=32 * 1024 * 1024,   # safe on v5e/v6e/v7x scoped limits
        ),
    )(xph, w_taps, scale, bias)


def conv_bn_act_reference(x, w, gamma, beta, mean, var, *, stride, padding, act,
                          eps=1e-5):
    """Pure-JAX reference mirroring ConvBNACT.forward (eval-mode BN)."""
    y = jax.lax.conv_general_dilated(
        x, w, window_strides=(stride, stride),
        padding=[(padding, padding), (padding, padding)],
        dimension_numbers=("NCHW", "OIHW", "NCHW"),
        precision=jax.lax.Precision.HIGHEST)
    inv_std = 1.0 / jnp.sqrt(var.astype(jnp.float32) + eps)
    scale = gamma.astype(jnp.float32) * inv_std
    bias = beta.astype(jnp.float32) - mean.astype(jnp.float32) * scale
    y = y * scale[None, :, None, None] + bias[None, :, None, None]
    if act == "relu":
        y = jnp.maximum(y, 0.0)
    elif act == "hard_swish":
        y = y * jnp.clip(y + 3.0, 0.0, 6.0) * (1.0 / 6.0)
    return y


if __name__ == "__main__":
    key = jax.random.PRNGKey(0)
    kx, kw1, kw2, kg, kb, km, kv = jax.random.split(key, 7)

    N, Cin, H, W = 2, 4, 16, 16
    Cout = 8

    # Quantize test data to bf16-representable f32 so results are insensitive
    # to the MXU's f32 pass count; kernel vs reference then differ only by
    # f32 accumulation order.
    def q(a):
        return a.astype(jnp.bfloat16).astype(jnp.float32)

    x = q(jax.random.normal(kx, (N, Cin, H, W), jnp.float32))

    gamma = q(1.0 + 0.1 * jax.random.normal(kg, (Cout,), jnp.float32))
    beta = q(0.1 * jax.random.normal(kb, (Cout,), jnp.float32))
    mean = q(0.1 * jax.random.normal(km, (Cout,), jnp.float32))
    var = q(0.5 + 0.5 * jnp.abs(jax.random.normal(kv, (Cout,), jnp.float32)))

    # --- Config A: MobileNetV3 stem-style ConvBNACT(3x3, stride=2, pad=1, hard_swish)
    w_a = q(0.2 * jax.random.normal(kw1, (Cout, Cin, 3, 3), jnp.float32))
    out_a = conv_bn_act(x, w_a, gamma, beta, mean, var,
                        stride=2, padding=1, act="hard_swish")
    out_a = jax.block_until_ready(out_a)
    ref_a = conv_bn_act_reference(x, w_a, gamma, beta, mean, var,
                                  stride=2, padding=1, act="hard_swish")
    assert out_a.shape == (N, Cout, 8, 8)
    assert jnp.allclose(out_a, ref_a, atol=1e-4, rtol=1e-4), "3x3/s2/hard_swish mismatch"

    # --- Config B: pointwise ConvBNACT(1x1, stride=1, pad=0, relu)
    w_b = q(0.2 * jax.random.normal(kw2, (Cout, Cin, 1, 1), jnp.float32))
    out_b = conv_bn_act(x, w_b, gamma, beta, mean, var,
                        stride=1, padding=0, act="relu")
    out_b = jax.block_until_ready(out_b)
    ref_b = conv_bn_act_reference(x, w_b, gamma, beta, mean, var,
                                  stride=1, padding=0, act="relu")
    assert out_b.shape == (N, Cout, 16, 16)
    assert jnp.allclose(out_b, ref_b, atol=1e-4, rtol=1e-4), "1x1/s1/relu mismatch"

    # --- Config C: same pointwise conv, act=None
    out_c = conv_bn_act(x, w_b, gamma, beta, mean, var,
                        stride=1, padding=0, act=None)
    out_c = jax.block_until_ready(out_c)
    ref_c = conv_bn_act_reference(x, w_b, gamma, beta, mean, var,
                                  stride=1, padding=0, act=None)
    assert jnp.allclose(out_c, ref_c, atol=1e-4, rtol=1e-4), "1x1/s1/no-act mismatch"

    print("KERNEL_OK")
</pallas_src>

<mosaic_0001>
module attributes {stable_mosaic.version = 11 : i64} {
  func.func @_conv_bn_act_kernel(%arg0: i32, %arg1: memref<1x2x4x18x9xf32, #tpu.memory_space<vmem>>, %arg2: memref<9x8x4xf32, #tpu.memory_space<vmem>>, %arg3: memref<8x1xf32, #tpu.memory_space<vmem>>, %arg4: memref<8x1xf32, #tpu.memory_space<vmem>>, %arg5: memref<1x8x8x8xf32, #tpu.memory_space<vmem>>) attributes {dimension_semantics = [#tpu.dimension_semantics<parallel>], iteration_bounds = array<i64: 2>, scalar_prefetch = 0 : i64, scratch_operands = 0 : i64, tpu.core_type = #tpu.core_type<tc>, window_params = [{transform_indices = @transform_0, window_bounds = array<i64: 1, 2, 4, 18, 9>}, {pipeline_mode = #tpu.pipeline_mode<synchronous>, transform_indices = @transform_1, window_bounds = array<i64: 9, 8, 4>}, {pipeline_mode = #tpu.pipeline_mode<synchronous>, transform_indices = @transform_2, window_bounds = array<i64: 8, 1>}, {pipeline_mode = #tpu.pipeline_mode<synchronous>, transform_indices = @transform_3, window_bounds = array<i64: 8, 1>}, {transform_indices = @transform_4, window_bounds = array<i64: 1, 8, 8, 8>}]} {
    %c0 = arith.constant 0 : index
    %c0_0 = arith.constant 0 : index
    %c0_1 = arith.constant 0 : index
    %0 = vector.load %arg2[%c0, %c0_0, %c0_1] : memref<9x8x4xf32, #tpu.memory_space<vmem>>, vector<9x8x4xf32>
    %c0_2 = arith.constant 0 : index
    %c0_3 = arith.constant 0 : index
    %1 = vector.load %arg3[%c0_2, %c0_3] : memref<8x1xf32, #tpu.memory_space<vmem>>, vector<8x1xf32>
    %c0_4 = arith.constant 0 : index
    %c0_5 = arith.constant 0 : index
    %2 = vector.load %arg4[%c0_4, %c0_5] : memref<8x1xf32, #tpu.memory_space<vmem>>, vector<8x1xf32>
    %c0_i32 = arith.constant 0 : i32
    %c8_i32 = arith.constant 8 : i32
    %3 = arith.addi %c0_i32, %c8_i32 : i32
    %c1_i32 = arith.constant 1 : i32
    scf.for %arg6 = %c0_i32 to %3 step %c1_i32  : i32 {
      %c1_i32_7 = arith.constant 1 : i32
      %4 = arith.muli %arg6, %c1_i32_7 : i32
      %c0_i32_8 = arith.constant 0 : i32
      %5 = arith.addi %c0_i32_8, %4 : i32
      %cst = arith.constant 0.000000e+00 : f32
      %6 = vector.broadcast %cst : f32 to vector<8x8xf32>
      %c2_i32 = arith.constant 2 : i32
      %7 = arith.muli %5, %c2_i32 : i32
      %c0_i32_9 = arith.constant 0 : i32
      %8 = arith.addi %7, %c0_i32_9 : i32
      %c0_10 = arith.constant 0 : index
      %c0_11 = arith.constant 0 : index
      %c0_12 = arith.constant 0 : index
      %9 = arith.index_cast %8 : i32 to index
      %c0_13 = arith.constant 0 : index
      %10 = vector.load %arg1[%c0_10, %c0_11, %c0_12, %9, %c0_13] : memref<1x2x4x18x9xf32, #tpu.memory_space<vmem>>, vector<1x1x4x1x8xf32>
      %11 = vector.shape_cast %10 : vector<1x1x4x1x8xf32> to vector<4x1x8xf32>
      %12 = vector.shape_cast %11 : vector<4x1x8xf32> to vector<4x8xf32>
      %13 = vector.extract_strided_slice %0 {offsets = [0, 0, 0], sizes = [1, 8, 4], strides = [1, 1, 1]} : vector<9x8x4xf32> to vector<1x8x4xf32>
      %14 = vector.shape_cast %13 : vector<1x8x4xf32> to vector<8x4xf32>
      %cst_14 = arith.constant dense<0.000000e+00> : vector<8x8xf32>
      %15 = tpu.matmul %14, %12, %cst_14 {dimension_numbers = #tpu.dot_dimension_numbers<[1], [0], [0], [1], [0, 0, 1, 1], [], []>} : vector<8x4xf32>, vector<4x8xf32>, vector<8x8xf32> -> vector<8x8xf32>
      %16 = arith.addf %6, %15 : vector<8x8xf32>
      %c0_15 = arith.constant 0 : index
      %c1 = arith.constant 1 : index
      %c0_16 = arith.constant 0 : index
      %17 = arith.index_cast %8 : i32 to index
      %c0_17 = arith.constant 0 : index
      %18 = vector.load %arg1[%c0_15, %c1, %c0_16, %17, %c0_17] : memref<1x2x4x18x9xf32, #tpu.memory_space<vmem>>, vector<1x1x4x1x8xf32>
      %19 = vector.shape_cast %18 : vector<1x1x4x1x8xf32> to vector<4x1x8xf32>
      %20 = vector.shape_cast %19 : vector<4x1x8xf32> to vector<4x8xf32>
      %21 = vector.extract_strided_slice %0 {offsets = [1, 0, 0], sizes = [1, 8, 4], strides = [1, 1, 1]} : vector<9x8x4xf32> to vector<1x8x4xf32>
      %22 = vector.shape_cast %21 : vector<1x8x4xf32> to vector<8x4xf32>
      %cst_18 = arith.constant dense<0.000000e+00> : vector<8x8xf32>
      %23 = tpu.matmul %22, %20, %cst_18 {dimension_numbers = #tpu.dot_dimension_numbers<[1], [0], [0], [1], [0, 0, 1, 1], [], []>} : vector<8x4xf32>, vector<4x8xf32>, vector<8x8xf32> -> vector<8x8xf32>
      %24 = arith.addf %16, %23 : vector<8x8xf32>
      %c0_19 = arith.constant 0 : index
      %c0_20 = arith.constant 0 : index
      %c0_21 = arith.constant 0 : index
      %25 = arith.index_cast %8 : i32 to index
      %c1_22 = arith.constant 1 : index
      %26 = vector.load %arg1[%c0_19, %c0_20, %c0_21, %25, %c1_22] : memref<1x2x4x18x9xf32, #tpu.memory_space<vmem>>, vector<1x1x4x1x8xf32>
      %27 = vector.shape_cast %26 : vector<1x1x4x1x8xf32> to vector<4x1x8xf32>
      %28 = vector.shape_cast %27 : vector<4x1x8xf32> to vector<4x8xf32>
      %29 = vector.extract_strided_slice %0 {offsets = [2, 0, 0], sizes = [1, 8, 4], strides = [1, 1, 1]} : vector<9x8x4xf32> to vector<1x8x4xf32>
      %30 = vector.shape_cast %29 : vector<1x8x4xf32> to vector<8x4xf32>
      %cst_23 = arith.constant dense<0.000000e+00> : vector<8x8xf32>
      %31 = tpu.matmul %30, %28, %cst_23 {dimension_numbers = #tpu.dot_dimension_numbers<[1], [0], [0], [1], [0, 0, 1, 1], [], []>} : vector<8x4xf32>, vector<4x8xf32>, vector<8x8xf32> -> vector<8x8xf32>
      %32 = arith.addf %24, %31 : vector<8x8xf32>
      %c2_i32_24 = arith.constant 2 : i32
      %33 = arith.muli %5, %c2_i32_24 : i32
      %c1_i32_25 = arith.constant 1 : i32
      %34 = arith.addi %33, %c1_i32_25 : i32
      %c0_26 = arith.constant 0 : index
      %c0_27 = arith.constant 0 : index
      %c0_28 = arith.constant 0 : index
      %35 = arith.index_cast %34 : i32 to index
      %c0_29 = arith.constant 0 : index
      %36 = vector.load %arg1[%c0_26, %c0_27, %c0_28, %35, %c0_29] : memref<1x2x4x18x9xf32, #tpu.memory_space<vmem>>, vector<1x1x4x1x8xf32>
      %37 = vector.shape_cast %36 : vector<1x1x4x1x8xf32> to vector<4x1x8xf32>
      %38 = vector.shape_cast %37 : vector<4x1x8xf32> to vector<4x8xf32>
      %39 = vector.extract_strided_slice %0 {offsets = [3, 0, 0], sizes = [1, 8, 4], strides = [1, 1, 1]} : vector<9x8x4xf32> to vector<1x8x4xf32>
      %40 = vector.shape_cast %39 : vector<1x8x4xf32> to vector<8x4xf32>
      %cst_30 = arith.constant dense<0.000000e+00> : vector<8x8xf32>
      %41 = tpu.matmul %40, %38, %cst_30 {dimension_numbers = #tpu.dot_dimension_numbers<[1], [0], [0], [1], [0, 0, 1, 1], [], []>} : vector<8x4xf32>, vector<4x8xf32>, vector<8x8xf32> -> vector<8x8xf32>
      %42 = arith.addf %32, %41 : vector<8x8xf32>
      %c0_31 = arith.constant 0 : index
      %c1_32 = arith.constant 1 : index
      %c0_33 = arith.constant 0 : index
      %43 = arith.index_cast %34 : i32 to index
      %c0_34 = arith.constant 0 : index
      %44 = vector.load %arg1[%c0_31, %c1_32, %c0_33, %43, %c0_34] : memref<1x2x4x18x9xf32, #tpu.memory_space<vmem>>, vector<1x1x4x1x8xf32>
      %45 = vector.shape_cast %44 : vector<1x1x4x1x8xf32> to vector<4x1x8xf32>
      %46 = vector.shape_cast %45 : vector<4x1x8xf32> to vector<4x8xf32>
      %47 = vector.extract_strided_slice %0 {offsets = [4, 0, 0], sizes = [1, 8, 4], strides = [1, 1, 1]} : vector<9x8x4xf32> to vector<1x8x4xf32>
      %48 = vector.shape_cast %47 : vector<1x8x4xf32> to vector<8x4xf32>
      %cst_35 = arith.constant dense<0.000000e+00> : vector<8x8xf32>
      %49 = tpu.matmul %48, %46, %cst_35 {dimension_numbers = #tpu.dot_dimension_numbers<[1], [0], [0], [1], [0, 0, 1, 1], [], []>} : vector<8x4xf32>, vector<4x8xf32>, vector<8x8xf32> -> vector<8x8xf32>
      %50 = arith.addf %42, %49 : vector<8x8xf32>
      %c0_36 = arith.constant 0 : index
      %c0_37 = arith.constant 0 : index
      %c0_38 = arith.constant 0 : index
      %51 = arith.index_cast %34 : i32 to index
      %c1_39 = arith.constant 1 : index
      %52 = vector.load %arg1[%c0_36, %c0_37, %c0_38, %51, %c1_39] : memref<1x2x4x18x9xf32, #tpu.memory_space<vmem>>, vector<1x1x4x1x8xf32>
      %53 = vector.shape_cast %52 : vector<1x1x4x1x8xf32> to vector<4x1x8xf32>
      %54 = vector.shape_cast %53 : vector<4x1x8xf32> to vector<4x8xf32>
      %55 = vector.extract_strided_slice %0 {offsets = [5, 0, 0], sizes = [1, 8, 4], strides = [1, 1, 1]} : vector<9x8x4xf32> to vector<1x8x4xf32>
      %56 = vector.shape_cast %55 : vector<1x8x4xf32> to vector<8x4xf32>
      %cst_40 = arith.constant dense<0.000000e+00> : vector<8x8xf32>
      %57 = tpu.matmul %56, %54, %cst_40 {dimension_numbers = #tpu.dot_dimension_numbers<[1], [0], [0], [1], [0, 0, 1, 1], [], []>} : vector<8x4xf32>, vector<4x8xf32>, vector<8x8xf32> -> vector<8x8xf32>
      %58 = arith.addf %50, %57 : vector<8x8xf32>
      %c2_i32_41 = arith.constant 2 : i32
      %59 = arith.muli %5, %c2_i32_41 : i32
      %c2_i32_42 = arith.constant 2 : i32
      %60 = arith.addi %59, %c2_i32_42 : i32
      %c0_43 = arith.constant 0 : index
      %c0_44 = arith.constant 0 : index
      %c0_45 = arith.constant 0 : index
      %61 = arith.index_cast %60 : i32 to index
      %c0_46 = arith.constant 0 : index
      %62 = vector.load %arg1[%c0_43, %c0_44, %c0_45, %61, %c0_46] : memref<1x2x4x18x9xf32, #tpu.memory_space<vmem>>, vector<1x1x4x1x8xf32>
      %63 = vector.shape_cast %62 : vector<1x1x4x1x8xf32> to vector<4x1x8xf32>
      %64 = vector.shape_cast %63 : vector<4x1x8xf32> to vector<4x8xf32>
      %65 = vector.extract_strided_slice %0 {offsets = [6, 0, 0], sizes = [1, 8, 4], strides = [1, 1, 1]} : vector<9x8x4xf32> to vector<1x8x4xf32>
      %66 = vector.shape_cast %65 : vector<1x8x4xf32> to vector<8x4xf32>
      %cst_47 = arith.constant dense<0.000000e+00> : vector<8x8xf32>
      %67 = tpu.matmul %66, %64, %cst_47 {dimension_numbers = #tpu.dot_dimension_numbers<[1], [0], [0], [1], [0, 0, 1, 1], [], []>} : vector<8x4xf32>, vector<4x8xf32>, vector<8x8xf32> -> vector<8x8xf32>
      %68 = arith.addf %58, %67 : vector<8x8xf32>
      %c0_48 = arith.constant 0 : index
      %c1_49 = arith.constant 1 : index
      %c0_50 = arith.constant 0 : index
      %69 = arith.index_cast %60 : i32 to index
      %c0_51 = arith.constant 0 : index
      %70 = vector.load %arg1[%c0_48, %c1_49, %c0_50, %69, %c0_51] : memref<1x2x4x18x9xf32, #tpu.memory_space<vmem>>, vector<1x1x4x1x8xf32>
      %71 = vector.shape_cast %70 : vector<1x1x4x1x8xf32> to vector<4x1x8xf32>
      %72 = vector.shape_cast %71 : vector<4x1x8xf32> to vector<4x8xf32>
      %73 = vector.extract_strided_slice %0 {offsets = [7, 0, 0], sizes = [1, 8, 4], strides = [1, 1, 1]} : vector<9x8x4xf32> to vector<1x8x4xf32>
      %74 = vector.shape_cast %73 : vector<1x8x4xf32> to vector<8x4xf32>
      %cst_52 = arith.constant dense<0.000000e+00> : vector<8x8xf32>
      %75 = tpu.matmul %74, %72, %cst_52 {dimension_numbers = #tpu.dot_dimension_numbers<[1], [0], [0], [1], [0, 0, 1, 1], [], []>} : vector<8x4xf32>, vector<4x8xf32>, vector<8x8xf32> -> vector<8x8xf32>
      %76 = arith.addf %68, %75 : vector<8x8xf32>
      %c0_53 = arith.constant 0 : index
      %c0_54 = arith.constant 0 : index
      %c0_55 = arith.constant 0 : index
      %77 = arith.index_cast %60 : i32 to index
      %c1_56 = arith.constant 1 : index
      %78 = vector.load %arg1[%c0_53, %c0_54, %c0_55, %77, %c1_56] : memref<1x2x4x18x9xf32, #tpu.memory_space<vmem>>, vector<1x1x4x1x8xf32>
      %79 = vector.shape_cast %78 : vector<1x1x4x1x8xf32> to vector<4x1x8xf32>
      %80 = vector.shape_cast %79 : vector<4x1x8xf32> to vector<4x8xf32>
      %81 = vector.extract_strided_slice %0 {offsets = [8, 0, 0], sizes = [1, 8, 4], strides = [1, 1, 1]} : vector<9x8x4xf32> to vector<1x8x4xf32>
      %82 = vector.shape_cast %81 : vector<1x8x4xf32> to vector<8x4xf32>
      %cst_57 = arith.constant dense<0.000000e+00> : vector<8x8xf32>
      %83 = tpu.matmul %82, %80, %cst_57 {dimension_numbers = #tpu.dot_dimension_numbers<[1], [0], [0], [1], [0, 0, 1, 1], [], []>} : vector<8x4xf32>, vector<4x8xf32>, vector<8x8xf32> -> vector<8x8xf32>
      %84 = arith.addf %76, %83 : vector<8x8xf32>
      %85 = vector.broadcast %1 : vector<8x1xf32> to vector<8x8xf32>
      %86 = arith.mulf %84, %85 : vector<8x8xf32>
      %87 = vector.broadcast %2 : vector<8x1xf32> to vector<8x8xf32>
      %88 = arith.addf %86, %87 : vector<8x8xf32>
      %cst_58 = arith.constant 3.000000e+00 : f32
      %89 = vector.broadcast %cst_58 : f32 to vector<8x8xf32>
      %90 = arith.addf %88, %89 : vector<8x8xf32>
      %cst_59 = arith.constant 0.000000e+00 : f32
      %cst_60 = arith.constant 6.000000e+00 : f32
      %91 = vector.broadcast %cst_59 : f32 to vector<8x8xf32>
      %92 = arith.maximumf %91, %90 : vector<8x8xf32>
      %93 = vector.broadcast %cst_60 : f32 to vector<8x8xf32>
      %94 = arith.minimumf %93, %92 : vector<8x8xf32>
      %95 = arith.mulf %88, %94 : vector<8x8xf32>
      %cst_61 = arith.constant 0.166666672 : f32
      %96 = vector.broadcast %cst_61 : f32 to vector<8x8xf32>
      %97 = arith.mulf %95, %96 : vector<8x8xf32>
      %98 = vector.shape_cast %97 : vector<8x8xf32> to vector<8x1x8xf32>
      %c0_62 = arith.constant 0 : index
      %c0_63 = arith.constant 0 : index
      %99 = arith.index_cast %5 : i32 to index
      %c0_64 = arith.constant 0 : index
      %100 = vector.load %arg5[%c0_62, %c0_63, %99, %c0_64] : memref<1x8x8x8xf32, #tpu.memory_space<vmem>>, vector<1x8x1x8xf32>
      %101 = vector.shape_cast %100 : vector<1x8x1x8xf32> to vector<8x1x8xf32>
      %102 = vector.shape_cast %98 : vector<8x1x8xf32> to vector<1x8x1x8xf32>
      tpu.vector_store %arg5[%c0_62, %c0_63, %99, %c0_64], %102 {strides = array<i32>} : memref<1x8x8x8xf32, #tpu.memory_space<vmem>>, vector<1x8x1x8xf32>,
    }
    %c8_i32_6 = arith.constant 8 : i32
    return
  }
  func.func @transform_0(%arg0: i32) -> (i32, i32, i32, i32, i32) {
    %c0_i32 = arith.constant 0 : i32
    %c0_i32_0 = arith.constant 0 : i32
    %c0_i32_1 = arith.constant 0 : i32
    %c0_i32_2 = arith.constant 0 : i32
    %c0_i32_3 = arith.constant 0 : i32
    return %arg0, %c0_i32, %c0_i32_0, %c0_i32_1, %c0_i32_2 : i32, i32, i32, i32, i32
  }
  func.func @transform_1(%arg0: i32) -> (i32, i32, i32) {
    %c0_i32 = arith.constant 0 : i32
    %c0_i32_0 = arith.constant 0 : i32
    %c0_i32_1 = arith.constant 0 : i32
    %c0_i32_2 = arith.constant 0 : i32
    return %c0_i32, %c0_i32_0, %c0_i32_1 : i32, i32, i32
  }
  func.func @transform_2(%arg0: i32) -> (i32, i32) {
    %c0_i32 = arith.constant 0 : i32
    %c0_i32_0 = arith.constant 0 : i32
    %c0_i32_1 = arith.constant 0 : i32
    return %c0_i32, %c0_i32_0 : i32, i32
  }
  func.func @transform_3(%arg0: i32) -> (i32, i32) {
    %c0_i32 = arith.constant 0 : i32
    %c0_i32_0 = arith.constant 0 : i32
    %c0_i32_1 = arith.constant 0 : i32
    return %c0_i32, %c0_i32_0 : i32, i32
  }
  func.func @transform_4(%arg0: i32) -> (i32, i32, i32, i32) {
    %c0_i32 = arith.constant 0 : i32
    %c0_i32_0 = arith.constant 0 : i32
    %c0_i32_1 = arith.constant 0 : i32
    %c0_i32_2 = arith.constant 0 : i32
    return %arg0, %c0_i32, %c0_i32_0, %c0_i32_1 : i32, i32, i32, i32
  }
}

</mosaic_0001>

<bundles_post_ra>
// kernel: tpu_custom_call.1
= control target key start
LH: loop header
LB: loop body
LE: loop exit
PB: predicated region body
PF: predicated region fallthrough
CT: control target
= control target key end

     0   :  { %9 = vsyncpa [#allocation3], 0  ;;  %s1776_s0 = inlined_call_operand.vmem [shape: f32[2,2,4,18,9], index: 0, kind: input, shape index: {}]   ;;  %s1777_s1 = inlined_call_operand.vmem [shape: f32[9,8,4], index: 1, kind: input, shape index: {}]   ;;  %s1778_s2 = inlined_call_operand.vmem [shape: f32[8,1], index: 2, kind: input, shape index: {}]   ;;  %s1779_s3 = inlined_call_operand.vmem [shape: f32[8,1], index: 3, kind: input, shape index: {}]   ;;  %s1780_s4 = inlined_call_operand.hbm [shape: f32[2,8,8,8], index: 4, kind: output, shape index: {}]  }
   0x1   :  { %11 = vsyncpa [#allocation3 + $0x1], 0  ;;  %s1482_s15 = smov 0   ;;  %s1484_s16 = smov 0  }
   0x2   :  { %s1486_s17 = smov 0   ;;  %s1488_s18 = smov 0  }
   0x3 LB: > { %s1503_s19 = sadd.s32 4294967295, %s1443_s18   ;;  %s1186_s20 = sadd.s32 4294967294, %s1443_s18   ;;  %s1443_s18 = sphi %s1488_s18, %s1786_s18   ;;  %s1439_s17 = sphi %s1486_s17, %s1785_s17   ;;  %s1435_s16 = sphi %s1484_s16, %s1784_s16   ;;  %s1431_s15 = sphi %s1482_s15, %s1783_s15  }
   0x4   : > { %s1507_s21 = sadd.s32 1, %s1443_s18   ;;  %s113_s22 = sadd.s32 1, %s1439_s17 }
   0x5   : > { %s110_s23 = ssub.s32 %s1443_s18, %s1507_s21  ;;  %p123_p0 = scmp.ne.s32.totalorder %s1439_s17, %s1435_s16 }
   0x6   : > { %p111_p1 = scmp.eq.s32.totalorder %s110_s23, 0  ;;  %p124_p2 = scmp.eq.s32.totalorder %s1503_s19, 1 }
   0x7   : > { %p129_p3 = scmp.ne.s32.totalorder %s1435_s16, %s1431_s15  ;;  %p130_p4 = scmp.eq.s32.totalorder %s1186_s20, 1 }
   0x8   : > { %s1518_s24 = scalar_select %p111_p1, %s1439_s17, %s113_s22  }
   0x9   : > { %p1520_p5 = por %p124_p2, %p123_p0  ;;  %p1524_p6 = por %p130_p4, %p129_p3 }
   0xa   : > { %p1189_p7 = scmp.ge.s32.totalorder %s1443_s18, 1  ;;  %p165_p8 = scmp.lt.s32.totalorder %s1443_s18, 3 }
   0xc   : > { %p166_p9 = pnand %p1189_p7, %p165_p8 }
   0xd   : > { %s188_s27 = sand.u32 (!%p166_p9), 1, %s1435_s16   ;;  %p191_p10 = scmp.lt.s32.totalorder (!%p166_p9), %s1503_s19, 1  ;;  %v1535_v0 = vld [vmem:[%s1777_s1] sm:$0xff] (!%p166_p9)  ;;  %v1540_v1 = vld [vmem:[%s1777_s1 + $0x8] sm:$0xff] (!%p166_p9)  ;;  %v1545_v2 = vld [vmem:[%s1777_s1 + $0x10] sm:$0xff] (!%p166_p9) }
   0xe   : > { %169 = sbr.rel (%p166_p9) target bundleno = 427 (0x1ab), region = 36  ;;  %s1549_s8 = sshll.u32 (!%p166_p9), %s188_s27, 6  ;;  %v1554_v3 = vld [vmem:[%s1777_s1 + $0x18] sm:$0xff] (!%p166_p9)  ;;  %v1559_v4 = vld [vmem:[%s1777_s1 + $0x20] sm:$0xff] (!%p166_p9)  ;;  %v1564_v5 = vld [vmem:[%s1777_s1 + $0x28] sm:$0xff] (!%p166_p9) }
   0xf   : > { %v1569_v6 = vld [vmem:[%s1777_s1 + $0x30] sm:$0xff] (!%p166_p9)  ;;  %v1574_v7 = vld [vmem:[%s1777_s1 + $0x38] sm:$0xff] (!%p166_p9)  ;;  %v1579_v8 = vld [vmem:[%s1777_s1 + $0x40] sm:$0xff] (!%p166_p9)  ;;  %s190_s20 = scalar_lea.vmem (!%p166_p9), [#allocation2], %s1549_s8  ;;  %s1598_s22 = smov (!%p166_p9), 0  }
  0x10   : > { %v1585_v9 = vld [vmem:[%s1778_s2] sm:$0xff] (!%p166_p9) }
  0x11   : > { %v1590_v10 = vld [vmem:[%s1779_s3] sm:$0xff] (!%p166_p9) }
  0x15   : > { %s192_s5 = scalar_select %p191_p10, %s1503_s19, 1 }
  0x17   : > { %s1320_s11 = smul.u32 192, %s192_s5 }
  0x19   : > { %s1595_s14 = scalar_lea.vmem %s1776_s0, %s1320_s11 }
  0x1a LB: >> { %v1449_v11 = vmov 0.0   ;;  %s1192_s23 = sshll.u32 %s1447_s22, 1  ;;  %vm1450_vm0 = vmmov 0   ;;  %vm230_vm1 = vcmask 1041409   ;;  %vm233_vm2 = vcmask 1042434   ;;  %s1451_s29 = smov 127   ;;  %s1447_s22 = sphi %s1598_s22, %s212_s22  }
  0x1b   : >> { %1260 = vmatprep.subr.mxu1 %v1449_v11  ;;  %1280 = vmatprep.subr.mxu0 %v1449_v11  ;;  %s1611_s28 = scalar_lea.vmem %s1595_s14, %s1192_s23  ;;  %vm236_vm3 = vcmask 1043459   ;;  %vm242_vm4 = vcmask 1043456   ;;  %vm238_vm5 = vcmask 31744   ;;  %s1077_s30 = scalar_lea.vmem %s190_s20, %s1447_s22 [#allocation2]  ;;  %vm1078_vm6 = vcmask 57344  }
  0x1c   : >> { %1262 = vmatprep.mubr.msk.f32.mxu1 %vm1450_vm0, %v1449_v11  ;;  %1282 = vmatprep.mubr.msk.f32.mxu0 %vm1450_vm0, %v1449_v11  ;;  %v1205_v12 = vld [vmem:[%s1611_s28 + $0x1] sm:$0x1]  ;;  %v1206_v13 = vld [vmem:[%s1611_s28 + $0x19] sm:$0x1]  ;;  %v1207_v14 = vld [vmem:[%s1611_s28 + $0x31] sm:$0x1] }
  0x1d   : >> { %v1208_v15 = vld [vmem:[%s1611_s28 + $0x49] sm:$0x1]  ;;  %v488_v16 = vrot.slane %v1206_v13, 7  ;;  %v490_v17 = vrot.slane %v1207_v14, 6  ;;  %v215_v18 = vld [vmem:[%s1611_s28] sm:$0x1] }
  0x1e   : >> { %v492_v19 = vrot.slane %v1208_v15, 5  ;;  %v216_v20 = vld [vmem:[%s1611_s28 + $0x18] sm:$0x1]  ;;  %v217_v21 = vld [vmem:[%s1611_s28 + $0x30] sm:$0x1]  ;;  %s212_s22 = sadd.s32 1, %s1447_s22  }
  0x1f   : >> { %v489_v22 = vsel %vm230_vm1, %v488_v16, %v1205_v12  ;;  %v218_v23 = vld [vmem:[%s1611_s28 + $0x48] sm:$0x1]  ;;  %v319_v24 = vrot.slane %v216_v20, 7  ;;  %v321_v25 = vrot.slane %v217_v21, 6  ;;  %v1221_v26 = vld [vmem:[%s1611_s28 + $0x2] sm:$0x1] }
  0x20   : >> { %v491_v27 = vsel %vm233_vm2, %v490_v17, %v489_v22  ;;  %v323_v28 = vrot.slane %v218_v23, 5  ;;  %v1222_v29 = vld [vmem:[%s1611_s28 + $0x1a] sm:$0x1]  ;;  %v1223_v30 = vld [vmem:[%s1611_s28 + $0x32] sm:$0x1]  ;;  %v1452_v20 = vmov 0  }
  0x21   : >> { %v1627_v31 = vsel %vm236_vm3, %v492_v19, %v491_v27  ;;  %v320_v32 = vsel %vm230_vm1, %v319_v24, %v215_v18  ;;  %v1224_v33 = vld [vmem:[%s1611_s28 + $0x4a] sm:$0x1]  ;;  %v750_v34 = vrot.slane %v1222_v29, 7  ;;  %v752_v35 = vrot.slane %v1223_v30, 6  ;;  %v1194_v36 = vld [vmem:[%s1611_s28 + $0x60] sm:$0x1]  ;;  %1375 = vset.pattern.permute.xlu1 %v1452_v20  ;;  %1376 = vset.pattern.permute.xlu0 %v1452_v20 }
  0x22   : >> { %662 = vrot.lane.b32.xlu0 %v1627_v31, %s1451_s29  ;;  %v322_v37 = vsel %vm233_vm2, %v321_v25, %v320_v32  ;;  %v754_v38 = vrot.slane %v1224_v33, 5  ;;  %v1195_v39 = vld [vmem:[%s1611_s28 + $0x78] sm:$0x1]  ;;  %v1196_v40 = vld [vmem:[%s1611_s28 + $0x90] sm:$0x1]  ;;  %p209_p11 = scmp.ge.s32.totalorder %s212_s22, 8  }
  0x23   : >> { %v324_v41 = vsel %vm236_vm3, %v323_v28, %v322_v37  ;;  %v751_v42 = vsel %vm230_vm1, %v750_v34, %v1221_v26  ;;  %v1197_v43 = vld [vmem:[%s1611_s28 + $0xa8] sm:$0x1]  ;;  %v229_v44 = vrot.slane %v1195_v39, 7  ;;  %v232_v45 = vrot.slane %v1196_v40, 6  ;;  %v1212_v46 = vld [vmem:[%s1611_s28 + $0x61] sm:$0x1] }
  0x24   : >> { %v753_v47 = vsel %vm233_vm2, %v752_v35, %v751_v42  ;;  %v235_v48 = vrot.slane %v1197_v43, 5  ;;  %v1213_v49 = vld [vmem:[%s1611_s28 + $0x79] sm:$0x1]  ;;  %v1214_v50 = vld [vmem:[%s1611_s28 + $0x91] sm:$0x1]  ;;  %v1024_v34 = vlaneseq  ;;  %s1241_s5 = sshll.u32 (%p209_p11), %s1503_s19, 10 }
  0x25   : >> { %v755_v51 = vsel %vm236_vm3, %v754_v38, %v753_v47  ;;  %v231_v52 = vsel %vm230_vm1, %v229_v44, %v1194_v36  ;;  %v1215_v53 = vld [vmem:[%s1611_s28 + $0xa9] sm:$0x1]  ;;  %v580_v54 = vrot.slane %v1213_v49, 7  ;;  %v582_v55 = vrot.slane %v1214_v50, 6  ;;  %v1228_v56 = vld [vmem:[%s1611_s28 + $0x62] sm:$0x1]  ;;  %s1727_s9 = scalar_lea.hbm (%p209_p11), %s1780_s4, %s1241_s5 }
  0x26   : >> { %400 = vrot.lane.b32.xlu0 %v324_v41, %s1451_s29  ;;  %924 = vrot.lane.b32.xlu1 %v755_v51, %s1451_s29  ;;  %v234_v57 = vsel %vm233_vm2, %v232_v45, %v231_v52  ;;  %v584_v58 = vrot.slane %v1215_v53, 5  ;;  %v1229_v59 = vld [vmem:[%s1611_s28 + $0x7a] sm:$0x1]  ;;  %v1230_v60 = vld [vmem:[%s1611_s28 + $0x92] sm:$0x1]  ;;  %s1101_s10 = sshll.u32 (%p209_p11), %s190_s20, 4  ;;  %s1731_s10 = int_to_ptr.vmem [resolvable:$true] %s1101_s10 }
  0x27   : >> { %v237_v61 = vsel %vm236_vm3, %v235_v48, %v234_v57  ;;  %v581_v62 = vsel %vm230_vm1, %v580_v54, %v1212_v46  ;;  %v1231_v63 = vld [vmem:[%s1611_s28 + $0xaa] sm:$0x1]  ;;  %v842_v12 = vrot.slane %v1229_v59, 7  ;;  %v844_v13 = vrot.slane %v1230_v60, 6  ;;  %s1735_s11 = scalar_lea.sflag (%p209_p11), [#allocation3], %s188_s27  ;;  %s1377_s12 = scalar_lea.vmem (%p209_p11), %s1731_s10, 1024 }
  0x28   : >> { %1261 = vmatpush3.msk.msra.mxu1 %vm242_vm4, %v237_v61  ;;  %v583_v14 = vsel %vm233_vm2, %v582_v55, %v581_v62  ;;  %v846_v15 = vrot.slane %v1231_v63, 5  ;;  %v1453_v32 = vmov 1966171168   ;;  %p1378_p12 = scmp.ne.s32.totalorder (%p209_p11), %s1731_s10, %s1377_s12  ;;  %s1454_s19 = smov (%p209_p11), [#allocation2]  }
  0x29   : >> { %1263 = vmatmul.mubr.msk.f32.vlgmr.msra.gmra.mrb[0].mxu1 %vm238_vm5, %v1540_v1  ;;  %v585_v16 = vsel %vm236_vm3, %v584_v58, %v583_v14  ;;  %1265 = vmatprep.subr.mxu1 %v1449_v11  ;;  %v843_v17 = vsel %vm230_vm1, %v842_v12, %v1228_v56  ;;  %v1022_v33 = vunpack.c.l.s4 %v1453_v32  ;;  %s1381_s13 = sshll.u32 (%p209_p11), %s1454_s19, 4  ;;  %s1382_s13 = int_to_ptr.vmem [resolvable:$false] %s1381_s13 }
  0x2a   : >> { %1281 = vmatpush3.msk.msra.mxu0 %vm242_vm4, %v585_v16  ;;  %1266 = vmatpush3.msk.msra.mxu1 %vm242_vm4, %v324_v41  ;;  %v845_v18 = vsel %vm233_vm2, %v844_v13, %v843_v17  ;;  %p1379_p13 = pnand (%p209_p11), %p1378_p12, %p1520_p5  ;;  %s1383_s14 = scalar_lea.vmem (%p209_p11), %s1382_s13, 2048 }
  0x2b   : >> { %1283 = vmatmul.mubr.msk.f32.vlgmr.msra.gmra.mrb[0].mxu0 %vm238_vm5, %v1559_v4  ;;  %1267 = vmatprep.mubr.msk.f32.mxu1 %vm1450_vm0, %v1449_v11  ;;  %v847_v19 = vsel %vm236_vm3, %v846_v15, %v845_v18  ;;  %v1023_v37 = vunpack.c.0.s8 %v1022_v33  ;;  %p1384_p1 = scmp.lt.s32.totalorder (%p209_p11), %s1731_s10, %s1382_s13  ;;  %p1385_p2 = scmp.lt.s32.totalorder (%p209_p11), %s1383_s14, %s1377_s12 }
  0x2c   : >> { %1285 = vmatprep.subr.mxu0 %v1449_v11  ;;  %1287 = vmatprep.mubr.msk.f32.mxu0 %vm1450_vm0, %v1449_v11  ;;  %p1380_p0 = pneg (%p209_p11), %p1379_p13 }
  0x2d   : >> { %1270 = vmatprep.subr.mxu1 %v1449_v11  ;;  %1004 = vperm.xlu1 %1375, %v1585_v9   ;;  %p1386_p3 = por (%p209_p11), %p1385_p2, %p1384_p1 }
  0x2e   : >> { %1010 = vperm.xlu0 %1376, %v1590_v10  }
  0x2f   : > { %p1387_p4 = pnand (%p209_p11), %p1386_p3, %p1380_p0 }
  0x31   : >> { %1268 = vmatmul.mubr.msk.f32.vlgmr.msra.gmra.mrb[0].mxu1 %vm238_vm5, %v1535_v0 }
  0x32   : >> { %1272 = vmatprep.mubr.msk.f32.mxu1 %vm1450_vm0, %v1449_v11 }
  0x94   : >> { %v663_v21 = vpop.permute.xlu0 %662 }
  0x95   : >> { %1286 = vmatpush3.msk.msra.mxu0 %vm242_vm4, %v663_v21 }
  0x96   : >> { %1288 = vmatmul.mubr.msk.f32.vlgmr.msra.gmra.mrb[0].mxu0 %vm238_vm5, %v1564_v5  ;;  %1290 = vmatprep.subr.mxu0 %v1449_v11 }
  0x97   : >> { %1291 = vmatpush3.msk.msra.mxu0 %vm242_vm4, %v755_v51  ;;  %1292 = vmatprep.mubr.msk.f32.mxu0 %vm1450_vm0, %v1449_v11 }
  0x98   : >> { %v401_v22 = vpop.permute.xlu0 %400  ;;  %1295 = vmatprep.subr.mxu0 %v1449_v11  ;;  %v925_v23 = vpop.permute.xlu1 %924 }
  0x99   : >> { %1271 = vmatpush3.msk.msra.mxu1 %vm242_vm4, %v401_v22 }
  0x9a   : >> { %1273 = vmatmul.mubr.msk.f32.vlgmr.msra.gmra.mrb[0].mxu1 %vm238_vm5, %v1545_v2  ;;  %1275 = vmatprep.subr.mxu1 %v1449_v11 }
  0x9b   : >> { %1276 = vmatpush3.msk.msra.mxu1 %vm242_vm4, %v1627_v31  ;;  %1277 = vmatprep.mubr.msk.f32.mxu1 %vm1450_vm0, %v1449_v11 }
  0x9e   : >> { %1293 = vmatmul.mubr.msk.f32.vlgmr.msra.gmra.mrb[0].mxu0 %vm238_vm5, %v1569_v6 }
  0x9f   : >> { %1296 = vmatpush3.msk.msra.mxu0 %vm242_vm4, %v847_v19  ;;  %1297 = vmatprep.mubr.msk.f32.mxu0 %vm1450_vm0, %v1449_v11 }
  0xa0   : >> { %1300 = vmatprep.subr.mxu0 %v1449_v11 }
  0xa2   : >> { %1278 = vmatmul.mubr.msk.f32.vlgmr.msra.gmra.mrb[0].mxu1 %vm238_vm5, %v1554_v3 }
  0xa6   : >> { %1298 = vmatmul.mubr.msk.f32.vlgmr.msra.gmra.mrb[0].mxu0 %vm238_vm5, %v1574_v7 }
  0xa7   : >> { %1301 = vmatpush3.msk.msra.mxu0 %vm242_vm4, %v925_v23  ;;  %1302 = vmatprep.mubr.msk.f32.mxu0 %vm1450_vm0, %v1449_v11  ;;  %v1025_v11 = vshrl.u32 %v1024_v34, 7 }
  0xa9   : >> { %v1026_v40 = vsub.s32 %v1023_v37, %v1025_v11 }
  0xac   : >> { %v1005_v27 = vpop.permute.xlu1 %1004 }
  0xad   : >> { %v1011_v30 = vpop.permute.xlu0 %1010 }
  0xae   : >> { %1303 = vmatmul.mubr.msk.f32.vlgmr.msra.gmra.mrb[0].mxu0 %vm238_vm5, %v1579_v8 }
 0x175   : >> { %v565_v24 = vpop.f32.mrb[0].mxu1 }
 0x176   : >> { %v1279_v25 = vpop.f32.mrb[1].mxu1 }
 0x181   : >> { %v997_v26 = vpop.f32.mrb[0].mxu0 }
 0x182   : >> { %v1305_v28 = vadd.f32 %v997_v26, %v565_v24  ;;  %v1304_v29 = vpop.f32.mrb[1].mxu0 }
 0x184   : >> { %v1007_v31 = vmul.f32 %v1305_v28, %v1005_v27 }
 0x186   : >> { %v1013_v35 = vadd.f32 %v1011_v30, %v1007_v31 }
 0x188   : >> { %v1014_v36 = vadd.f32 3.0, %v1013_v35 }
 0x18a   : >> { %v1015_v38 = vmax.f32 %v1014_v36, 0.0 }
 0x18c   : >> { %v1016_v39 = vmin.f32 %v1015_v38, 6.0 }
 0x18e   : >> { %v1017_v41 = vmul.f32 %v1016_v39, %v1013_v35 }
 0x190   : >> { %v1018_v42 = vmul.f32 0.16666667, %v1017_v41 }
 0x192   : >> { %v1020_v43 = vcombine.high %v1018_v42, %v1018_v42  ;;  %v1027_v44 = vrot.slane %v1018_v42, %v1026_v40 }
 0x194   : >> { %v1034_v45 = vrot.slane %v1020_v43, %v1026_v40  ;;  %v1035_v46 = vcombine.high %v1027_v44, %v1027_v44  ;;  %v1043_v47 = vrot.slane %v1027_v44, %v1026_v40 }
 0x196   : >> { %v1036_v48 = vcombine.high %v1034_v45, %v1034_v45  ;;  %v1050_v49 = vrot.slane %v1034_v45, %v1026_v40  ;;  %v1057_v50 = vrot.slane %v1035_v46, %v1026_v40  ;;  %v1065_v51 = vcombine.high %v1043_v47, %v1043_v47  ;;  %1079 = vst.msk [vmem:[%s1077_s30] sm:$0x1] %vm1078_vm6, %v1043_v47  ;;  %211 = sbr.rel (!%p209_p11) target bundleno = 26 (0x1a), region = 85 }
 0x198   : >> { %v1064_v52 = vrot.slane %v1036_v48, %v1026_v40  ;;  %v1066_v53 = vcombine.high %v1050_v49, %v1050_v49  ;;  %v1067_v54 = vcombine.high %v1057_v50, %v1057_v50  ;;  %1080 = vst.msk [vmem:[%s1077_s30 + $0x8] sm:$0x1] %vm1078_vm6, %v1057_v50  ;;  %1081 = vst.msk [vmem:[%s1077_s30 + $0x10] sm:$0x1] %vm1078_vm6, %v1065_v51 }
 0x199   : >> { %1083 = vst.msk [vmem:[%s1077_s30 + $0x20] sm:$0x1] %vm1078_vm6, %v1050_v49 }
 0x19a   : >> { %v1068_v55 = vcombine.high %v1064_v52, %v1064_v52  ;;  %1082 = vst.msk [vmem:[%s1077_s30 + $0x18] sm:$0x1] %vm1078_vm6, %v1067_v54  ;;  %1084 = vst.msk [vmem:[%s1077_s30 + $0x28] sm:$0x1] %vm1078_vm6, %v1064_v52 }
 0x19b   : >> { %1085 = vst.msk [vmem:[%s1077_s30 + $0x30] sm:$0x1] %vm1078_vm6, %v1066_v53 }
 0x19c   : >> { %1086 = vst.msk [vmem:[%s1077_s30 + $0x38] sm:$0x1] %vm1078_vm6, %v1068_v55 }
 0x19d   : > { %1390 = shalt.err (!%p1387_p4)
}
 0x19e   : > { %s1391_s27 = scalar_lea.hbm %s1727_s9, 1024  ;;  %s1395_s22 = scalar_lea.hbm %s1780_s4, 2048 }
 0x19f   : > { %p1392_p7 = scmp.ne.s32.totalorder %s1727_s9, %s1391_s27  ;;  %p1396_p10 = scmp.lt.u32.totalorder %s1727_s9, %s1780_s4 }
 0x1a0   : > { %p1397_p11 = scmp.lt.u32.totalorder %s1395_s22, %s1391_s27  ;;  %p1399_p13 = scmp.lt.u32.totalorder %s1391_s27, %s1727_s9 }
 0x1a1   : > { %p1393_p8 = pnand %p1392_p7, %p1520_p5 }
 0x1a2   : > { %p1398_p12 = por %p1397_p11, %p1396_p10 }
 0x1a3   : > { %p1394_p9 = pneg %p1393_p8 }
 0x1a4   : > { %p1400_p0 = por %p1399_p13, %p1398_p12 }
 0x1a6   : > { %p1401_p1 = pnand %p1400_p0, %p1394_p9 }
 0x1a8   : > { %1404 = shalt.err (!%p1401_p1)
}
 0x1a9   : > { %s1455_s29 = smov 128   ;;  %s1456_s30 = smov 8  }
 0x1aa   : > { %1321 = dma.vmem_to_hbm [thread:$0]  (%p1520_p5), %s1731_s10, 1024, %s1727_s9, %s1735_s11, %s1455_s29, %s1455_s29, %s1456_s30  }
 0x1ab PF: > { %p1327_p2 = scmp.ge.s32.totalorder %s1443_s18, 2  ;;  %s1116_s5 = sand.u32 1, %s1431_s15  }
 0x1ac   : > { %s1117_s6 = scalar_lea.sflag [#allocation3], %s1116_s5 }
 0x1ad   : > { %p1324_p3 = pnand %p1327_p2, %p1524_p6 }
 0x1af   : > { %1426 = dma.done.wait (!%p1324_p3), %s1117_s6, 1024  }
 0x1b0   : > { %1428 = vsyncadd (!%p1324_p3), %s1117_s6, 4294966272  ;;  %p14_p4 = scmp.ge.s32.totalorder %s1507_s21, 4   ;;  %s1783_s15 = smov %s1435_s16 }
 0x1b1   : > { %s1784_s16 = smov %s1439_s17  ;;  %s1785_s17 = smov %s1518_s24 }
 0x1b2   : > { %s1786_s18 = smov %s1507_s21  ;;  %16 = sbr.rel (!%p14_p4) target bundleno = 3 (0x3), region = 96 }
 0x1b9   :  { %1122 = vsyncpa [#allocation3], 1 }
 0x1ba   :  { %1124 = vsyncpa [#allocation3 + $0x1], 1 }

</bundles_post_ra>
